<compile_context>
chip_gen: v5e
topology: v5e:2x2
jax: 0.10.0
libtpu: 0.0.40
codegen_flags: <defaults>
</compile_context>

<pallas_src>
import functools
import math

import jax
import jax.numpy as jnp
import numpy as np
from jax.experimental import pallas as pl
from jax.experimental.pallas import tpu as pltpu


def _round_up(x, m):
    return (x + m - 1) // m * m


def _ffn_kernel(x_ref, gamma_ref, beta_ref, w1_ref, b1_ref, w2_ref, b2_ref,
                o_ref, xn_ref, acc_ref, *, eps, d_valid, approx_gelu):
    k = pl.program_id(1)
    d_pad = x_ref.shape[1]

    # ---- prologue (once per row tile): LayerNorm cached, acc = x + b2 ----
    @pl.when(k == 0)
    def _():
        x = x_ref[...].astype(jnp.float32)
        if d_valid == d_pad:
            mu = jnp.mean(x, axis=-1, keepdims=True)
            diff = x - mu
            var = jnp.mean(diff * diff, axis=-1, keepdims=True)
        else:
            # Feature dim is zero-padded to a lane-dense width; keep the
            # LayerNorm statistics over the true d_model lanes only.
            lane = jax.lax.broadcasted_iota(jnp.int32, x.shape, 1)
            valid = lane < d_valid
            inv_d = 1.0 / d_valid
            mu = jnp.sum(x, axis=-1, keepdims=True) * inv_d
            diff = jnp.where(valid, x - mu, 0.0)
            var = jnp.sum(diff * diff, axis=-1, keepdims=True) * inv_d
        xn = diff * jax.lax.rsqrt(var + eps)
        xn = xn * gamma_ref[...] + beta_ref[...]
        xn_ref[...] = xn.astype(xn_ref.dtype)          # bf16 MXU-operand cache
        # Fold residual + fc2 bias into the accumulator init so the epilogue
        # is only a cast + store.
        acc_ref[...] = x + b2_ref[...]

    # ---- fc1 chunk + GELU ----
    h = jnp.dot(xn_ref[...], w1_ref[...], preferred_element_type=jnp.float32)
    h = h + b1_ref[...]
    if approx_gelu:
        h = jax.nn.gelu(h, approximate=True)            # tanh -> EUP slot
    else:
        h = 0.5 * h * (1.0 + jax.lax.erf(h * (1.0 / math.sqrt(2.0))))
    # TODO(synk): training-mode dropout would mask `h`/output via pltpu.prng_random_bits.

    # ---- fc2 chunk: accumulate partial products over the F axis ----
    acc_ref[...] += jnp.dot(h.astype(w2_ref.dtype), w2_ref[...],
                            preferred_element_type=jnp.float32)

    # ---- epilogue (last F chunk): one lane-dense store ----
    @pl.when(k == pl.num_programs(1) - 1)
    def _():
        o_ref[...] = acc_ref[...].astype(o_ref.dtype)


def feed_forward_block(x, gamma, beta, w1, b1, w2, b2, *, eps=1e-5,
                       tm=1024, tf=1024, mxu_dtype=jnp.bfloat16,
                       approx_gelu=False):
    """x: [B, S, D].  Weights stored as [D, F] / [F, D] (transposed vs torch).

    Returns x + fc2(gelu(fc1(layernorm(x)))).  MXU operands are cast to
    `mxu_dtype` (bf16 by default, ~4x matmul throughput); accumulation is f32.
    """
    B, S, D = x.shape
    F = w1.shape[1]
    N = B * S

    # ---- lane-dense feature padding ----
    d_pad = _round_up(D, 128)
    f_pad = _round_up(F, 128)

    # tf: largest multiple of 128 <= requested that DIVIDES f_pad (no F over-pad).
    tf = max(128, (min(tf, f_pad) // 128) * 128)
    while f_pad % tf:
        tf -= 128

    # Row tile: multiple of 8; keep >=2 row tiles when N is large so the
    # "parallel" axis actually shards across the two v7x TensorCores.
    n8 = _round_up(N, 8)
    tm = max(8, (min(tm, n8) // 8) * 8)
    if n8 >= 1024 and pl.cdiv(n8, tm) < 2:
        tm = _round_up(pl.cdiv(n8, 2), 8)

    # ---- generation-aware VMEM budget (physical minus 16 MiB headroom) ----
    try:
        info = pltpu.get_tpu_info()
        vmem_phys = getattr(info, "vmem_capacity_bytes", 64 * 1024 * 1024)
    except Exception:  # interpret mode / unknown chip
        vmem_phys = 64 * 1024 * 1024
    vmem_limit = max(32 * 1024 * 1024, vmem_phys - 16 * 1024 * 1024)

    x_bytes = jnp.dtype(x.dtype).itemsize
    w_bytes = jnp.dtype(mxu_dtype).itemsize

    def _vmem_est(tm_, tf_):
        io = 2 * tm_ * d_pad * 2 * x_bytes                      # x + out, double-buffered
        wts = 2 * 2 * d_pad * tf_ * w_bytes + 2 * 4 * (tf_ + 3 * d_pad)
        scratch = tm_ * d_pad * (w_bytes + 4)                   # xn cache + f32 acc
        return io + wts + scratch

    # Shrink tm first (cheapest: only lowers arithmetic intensity), then tf.
    while _vmem_est(tm, tf) > vmem_limit and (tm > 256 or tf > 128):
        if tm > 256:
            tm = max(256, ((tm // 2) // 8) * 8)
        else:
            new_tf = tf - 128
            while new_tf > 128 and f_pad % new_tf:
                new_tf -= 128
            tf = max(128, new_tf)

    n_pad = _round_up(N, tm)

    # ---- padded / cast operands ----
    x2 = jnp.pad(x.reshape(N, D), ((0, n_pad - N), (0, d_pad - D)))
    gamma2 = jnp.pad(gamma.astype(jnp.float32), (0, d_pad - D)).reshape(1, d_pad)
    beta2 = jnp.pad(beta.astype(jnp.float32), (0, d_pad - D)).reshape(1, d_pad)
    w1p = jnp.pad(w1.astype(mxu_dtype), ((0, d_pad - D), (0, f_pad - F)))
    b1p = jnp.pad(b1.astype(jnp.float32), (0, f_pad - F)).reshape(1, f_pad)
    w2p = jnp.pad(w2.astype(mxu_dtype), ((0, f_pad - F), (0, d_pad - D)))
    b2p = jnp.pad(b2.astype(jnp.float32), (0, d_pad - D)).reshape(1, d_pad)

    kernel = functools.partial(_ffn_kernel, eps=eps, d_valid=D,
                               approx_gelu=approx_gelu)
    grid = (n_pad // tm, f_pad // tf)
    n_row_tiles = grid[0]

    # Honest byte count: weights are re-streamed once per row tile.
    cost = pl.CostEstimate(
        flops=4 * n_pad * d_pad * f_pad,
        transcendentals=n_pad * f_pad,
        bytes_accessed=(2 * n_pad * d_pad * x_bytes
                        + n_row_tiles * 2 * d_pad * f_pad * w_bytes
                        + 4 * (f_pad + 3 * d_pad)),
    )

    out = pl.pallas_call(
        kernel,
        out_shape=jax.ShapeDtypeStruct((n_pad, d_pad), x.dtype),
        grid_spec=pltpu.PrefetchScalarGridSpec(
            num_scalar_prefetch=0,
            grid=grid,
            in_specs=[
                pl.BlockSpec((tm, d_pad), lambda i, k: (i, 0)),   # x tile (resident across k)
                pl.BlockSpec((1, d_pad), lambda i, k: (0, 0)),    # gamma
                pl.BlockSpec((1, d_pad), lambda i, k: (0, 0)),    # beta
                pl.BlockSpec((d_pad, tf), lambda i, k: (0, k)),   # W1 chunk
                pl.BlockSpec((1, tf), lambda i, k: (0, k)),       # b1 chunk
                pl.BlockSpec((tf, d_pad), lambda i, k: (k, 0)),   # W2 chunk
                pl.BlockSpec((1, d_pad), lambda i, k: (0, 0)),    # b2
            ],
            out_specs=pl.BlockSpec((tm, d_pad), lambda i, k: (i, 0)),
            scratch_shapes=[
                pltpu.VMEM((tm, d_pad), mxu_dtype),    # cached LayerNorm(x)
                pltpu.VMEM((tm, d_pad), jnp.float32),  # fc2 accumulator (+x+b2)
            ],
        ),
        compiler_params=pltpu.CompilerParams(
            dimension_semantics=("parallel", "arbitrary"),
            vmem_limit_bytes=int(vmem_limit),
        ),
        cost_estimate=cost,
    )(x2, gamma2, beta2, w1p, b1p, w2p, b2p)

    return out[:N, :D].reshape(B, S, D)


def _reference(x, gamma, beta, w1, b1, w2, b2, eps=1e-5):
    mu = jnp.mean(x, axis=-1, keepdims=True)
    var = jnp.mean((x - mu) ** 2, axis=-1, keepdims=True)
    xn = (x - mu) / jnp.sqrt(var + eps) * gamma + beta
    h = xn @ w1 + b1
    h = 0.5 * h * (1.0 + jax.lax.erf(h / jnp.sqrt(2.0)))
    y = h @ w2 + b2
    return x + y


if __name__ == "__main__":
    # Small shapes consistent with the module: tokens [B, S, d_model].
    B, S = 2, 8
    d_model, d_feedforward = 32, 64
    dropout = 0.1  # eval mode → identity

    key = jax.random.PRNGKey(0)
    kx, k1, k2, k3, k4 = jax.random.split(key, 5)

    x = jax.random.normal(kx, (B, S, d_model), dtype=jnp.float32)

    # Deterministic parameter init (torch-style uniform bounds, seeded).
    bound1 = 1.0 / math.sqrt(d_model)
    bound2 = 1.0 / math.sqrt(d_feedforward)
    w1 = jax.random.uniform(k1, (d_model, d_feedforward), jnp.float32,
                            -bound1, bound1)
    b1 = jax.random.uniform(k2, (d_feedforward,), jnp.float32, -bound1, bound1)
    w2 = jax.random.uniform(k3, (d_feedforward, d_model), jnp.float32,
                            -bound2, bound2)
    b2 = jax.random.uniform(k4, (d_model,), jnp.float32, -bound2, bound2)
    gamma = jnp.ones((d_model,), jnp.float32)
    beta = jnp.zeros((d_model,), jnp.float32)

    ref = _reference(x, gamma, beta, w1, b1, w2, b2)

    # Default fast path: bf16 MXU operands, f32 accumulation → looser tolerance.
    out = feed_forward_block(x, gamma, beta, w1, b1, w2, b2)
    out = jax.block_until_ready(out)
    np.testing.assert_allclose(np.asarray(out), np.asarray(ref),
                               rtol=5e-2, atol=5e-2)

    # Opt-in f32 parity path: tight tolerance against the f32 reference.
    out_f32 = feed_forward_block(x, gamma, beta, w1, b1, w2, b2,
                                 mxu_dtype=jnp.float32)
    out_f32 = jax.block_until_ready(out_f32)
    np.testing.assert_allclose(np.asarray(out_f32), np.asarray(ref),
                               rtol=1e-5, atol=1e-5)

    print("KERNEL_OK")
</pallas_src>

<mosaic_0001>
module attributes {stable_mosaic.version = 11 : i64} {
  func.func @_ffn_kernel(%arg0: i32, %arg1: i32, %arg2: memref<16x128xf32, #tpu.memory_space<vmem>>, %arg3: memref<1x128xf32, #tpu.memory_space<vmem>>, %arg4: memref<1x128xf32, #tpu.memory_space<vmem>>, %arg5: memref<128x128xbf16, #tpu.memory_space<vmem>>, %arg6: memref<1x128xf32, #tpu.memory_space<vmem>>, %arg7: memref<128x128xbf16, #tpu.memory_space<vmem>>, %arg8: memref<1x128xf32, #tpu.memory_space<vmem>>, %arg9: memref<16x128xf32, #tpu.memory_space<vmem>>, %arg10: memref<16x128xbf16, #tpu.memory_space<vmem>>, %arg11: memref<16x128xf32, #tpu.memory_space<vmem>>) attributes {dimension_semantics = [#tpu.dimension_semantics<parallel>, #tpu.dimension_semantics<arbitrary>], iteration_bounds = array<i64: 1, 1>, scalar_prefetch = 0 : i64, scratch_operands = 2 : i64, tpu.core_type = #tpu.core_type<tc>, window_params = [{transform_indices = @transform_0, window_bounds = array<i64: 16, 128>}, {pipeline_mode = #tpu.pipeline_mode<synchronous>, transform_indices = @transform_1, window_bounds = array<i64: 1, 128>}, {pipeline_mode = #tpu.pipeline_mode<synchronous>, transform_indices = @transform_2, window_bounds = array<i64: 1, 128>}, {transform_indices = @transform_3, window_bounds = array<i64: 128, 128>}, {transform_indices = @transform_4, window_bounds = array<i64: 1, 128>}, {transform_indices = @transform_5, window_bounds = array<i64: 128, 128>}, {pipeline_mode = #tpu.pipeline_mode<synchronous>, transform_indices = @transform_6, window_bounds = array<i64: 1, 128>}, {transform_indices = @transform_7, window_bounds = array<i64: 16, 128>}]} {
    %c0_i32 = arith.constant 0 : i32
    %0 = arith.cmpi eq, %arg1, %c0_i32 : i32
    %1 = arith.extui %0 : i1 to i32
    %c0_i32_0 = arith.constant 0 : i32
    %2 = arith.cmpi ne, %1, %c0_i32_0 : i32
    scf.if %2 {
      %c0_18 = arith.constant 0 : index
      %c0_19 = arith.constant 0 : index
      %26 = vector.load %arg2[%c0_18, %c0_19] : memref<16x128xf32, #tpu.memory_space<vmem>>, vector<16x128xf32>
      %27 = tpu.iota {dimensions = array<i32: 1>} : vector<16x128xi32>
      %c32_i32 = arith.constant 32 : i32
      %28 = vector.broadcast %c32_i32 : i32 to vector<16x128xi32>
      %29 = arith.cmpi slt, %27, %28 : vector<16x128xi32>
      %cst_20 = arith.constant dense<0.000000e+00> : vector<16xf32>
      %30 = vector.multi_reduction <add>, %26, %cst_20 [1] : vector<16x128xf32> to vector<16xf32>
      %31 = vector.shape_cast %30 : vector<16xf32> to vector<16x1xf32>
      %cst_21 = arith.constant 3.125000e-02 : f32
      %32 = vector.broadcast %cst_21 : f32 to vector<16x1xf32>
      %33 = arith.mulf %31, %32 : vector<16x1xf32>
      %34 = vector.broadcast %33 : vector<16x1xf32> to vector<16x128xf32>
      %35 = arith.subf %26, %34 : vector<16x128xf32>
      %cst_22 = arith.constant 0.000000e+00 : f32
      %36 = vector.broadcast %cst_22 : f32 to vector<16x128xf32>
      %37 = arith.select %29, %35, %36 : vector<16x128xi1>, vector<16x128xf32>
      %38 = arith.mulf %37, %37 : vector<16x128xf32>
      %cst_23 = arith.constant dense<0.000000e+00> : vector<16xf32>
      %39 = vector.multi_reduction <add>, %38, %cst_23 [1] : vector<16x128xf32> to vector<16xf32>
      %40 = vector.shape_cast %39 : vector<16xf32> to vector<16x1xf32>
      %cst_24 = arith.constant 3.125000e-02 : f32
      %41 = vector.broadcast %cst_24 : f32 to vector<16x1xf32>
      %42 = arith.mulf %40, %41 : vector<16x1xf32>
      %cst_25 = arith.constant 9.99999974E-6 : f32
      %43 = vector.broadcast %cst_25 : f32 to vector<16x1xf32>
      %44 = arith.addf %42, %43 : vector<16x1xf32>
      %45 = math.rsqrt %44 : vector<16x1xf32>
      %46 = vector.broadcast %45 : vector<16x1xf32> to vector<16x128xf32>
      %47 = arith.mulf %37, %46 : vector<16x128xf32>
      %c0_26 = arith.constant 0 : index
      %c0_27 = arith.constant 0 : index
      %48 = vector.load %arg3[%c0_26, %c0_27] : memref<1x128xf32, #tpu.memory_space<vmem>>, vector<1x128xf32>
      %49 = vector.broadcast %48 : vector<1x128xf32> to vector<16x128xf32>
      %50 = arith.mulf %47, %49 : vector<16x128xf32>
      %c0_28 = arith.constant 0 : index
      %c0_29 = arith.constant 0 : index
      %51 = vector.load %arg4[%c0_28, %c0_29] : memref<1x128xf32, #tpu.memory_space<vmem>>, vector<1x128xf32>
      %52 = vector.broadcast %51 : vector<1x128xf32> to vector<16x128xf32>
      %53 = arith.addf %50, %52 : vector<16x128xf32>
      %54 = arith.truncf %53 : vector<16x128xf32> to vector<16x128xbf16>
      %c0_30 = arith.constant 0 : index
      %c0_31 = arith.constant 0 : index
      %55 = vector.load %arg10[%c0_30, %c0_31] : memref<16x128xbf16, #tpu.memory_space<vmem>>, vector<16x128xbf16>
      tpu.vector_store %arg10[%c0_30, %c0_31], %54 {strides = array<i32>} : memref<16x128xbf16, #tpu.memory_space<vmem>>, vector<16x128xbf16>,
      %c0_32 = arith.constant 0 : index
      %c0_33 = arith.constant 0 : index
      %56 = vector.load %arg8[%c0_32, %c0_33] : memref<1x128xf32, #tpu.memory_space<vmem>>, vector<1x128xf32>
      %57 = vector.broadcast %56 : vector<1x128xf32> to vector<16x128xf32>
      %58 = arith.addf %26, %57 : vector<16x128xf32>
      %c0_34 = arith.constant 0 : index
      %c0_35 = arith.constant 0 : index
      %59 = vector.load %arg11[%c0_34, %c0_35] : memref<16x128xf32, #tpu.memory_space<vmem>>, vector<16x128xf32>
      tpu.vector_store %arg11[%c0_34, %c0_35], %58 {strides = array<i32>} : memref<16x128xf32, #tpu.memory_space<vmem>>, vector<16x128xf32>,
    } else {
    }
    %c0 = arith.constant 0 : index
    %c0_1 = arith.constant 0 : index
    %3 = vector.load %arg10[%c0, %c0_1] : memref<16x128xbf16, #tpu.memory_space<vmem>>, vector<16x128xbf16>
    %c0_2 = arith.constant 0 : index
    %c0_3 = arith.constant 0 : index
    %4 = vector.load %arg5[%c0_2, %c0_3] : memref<128x128xbf16, #tpu.memory_space<vmem>>, vector<128x128xbf16>
    %cst = arith.constant dense<0.000000e+00> : vector<16x128xf32>
    %5 = tpu.matmul %3, %4, %cst {dimension_numbers = #tpu.dot_dimension_numbers<[1], [0], [0], [1], [0, 0, 1, 1], [], []>} : vector<16x128xbf16>, vector<128x128xbf16>, vector<16x128xf32> -> vector<16x128xf32>
    %c0_4 = arith.constant 0 : index
    %c0_5 = arith.constant 0 : index
    %6 = vector.load %arg6[%c0_4, %c0_5] : memref<1x128xf32, #tpu.memory_space<vmem>>, vector<1x128xf32>
    %7 = vector.broadcast %6 : vector<1x128xf32> to vector<16x128xf32>
    %8 = arith.addf %5, %7 : vector<16x128xf32>
    %cst_6 = arith.constant 5.000000e-01 : f32
    %9 = vector.broadcast %cst_6 : f32 to vector<16x128xf32>
    %10 = arith.mulf %9, %8 : vector<16x128xf32>
    %cst_7 = arith.constant 0.707106769 : f32
    %11 = vector.broadcast %cst_7 : f32 to vector<16x128xf32>
    %12 = arith.mulf %8, %11 : vector<16x128xf32>
    %13 = math.erf %12 : vector<16x128xf32>
    %cst_8 = arith.constant 1.000000e+00 : f32
    %14 = vector.broadcast %cst_8 : f32 to vector<16x128xf32>
    %15 = arith.addf %14, %13 : vector<16x128xf32>
    %16 = arith.mulf %10, %15 : vector<16x128xf32>
    %c0_9 = arith.constant 0 : index
    %c0_10 = arith.constant 0 : index
    %17 = vector.load %arg11[%c0_9, %c0_10] : memref<16x128xf32, #tpu.memory_space<vmem>>, vector<16x128xf32>
    %18 = arith.truncf %16 : vector<16x128xf32> to vector<16x128xbf16>
    %c0_11 = arith.constant 0 : index
    %c0_12 = arith.constant 0 : index
    %19 = vector.load %arg7[%c0_11, %c0_12] : memref<128x128xbf16, #tpu.memory_space<vmem>>, vector<128x128xbf16>
    %cst_13 = arith.constant dense<0.000000e+00> : vector<16x128xf32>
    %20 = tpu.matmul %18, %19, %cst_13 {dimension_numbers = #tpu.dot_dimension_numbers<[1], [0], [0], [1], [0, 0, 1, 1], [], []>} : vector<16x128xbf16>, vector<128x128xbf16>, vector<16x128xf32> -> vector<16x128xf32>
    %21 = arith.addf %17, %20 : vector<16x128xf32>
    %c0_14 = arith.constant 0 : index
    %c0_15 = arith.constant 0 : index
    %22 = vector.load %arg11[%c0_14, %c0_15] : memref<16x128xf32, #tpu.memory_space<vmem>>, vector<16x128xf32>
    tpu.vector_store %arg11[%c0_14, %c0_15], %21 {strides = array<i32>} : memref<16x128xf32, #tpu.memory_space<vmem>>, vector<16x128xf32>,
    %c0_i32_16 = arith.constant 0 : i32
    %23 = arith.cmpi eq, %arg1, %c0_i32_16 : i32
    %24 = arith.extui %23 : i1 to i32
    %c0_i32_17 = arith.constant 0 : i32
    %25 = arith.cmpi ne, %24, %c0_i32_17 : i32
    scf.if %25 {
      %c0_18 = arith.constant 0 : index
      %c0_19 = arith.constant 0 : index
      %26 = vector.load %arg11[%c0_18, %c0_19] : memref<16x128xf32, #tpu.memory_space<vmem>>, vector<16x128xf32>
      %c0_20 = arith.constant 0 : index
      %c0_21 = arith.constant 0 : index
      %27 = vector.load %arg9[%c0_20, %c0_21] : memref<16x128xf32, #tpu.memory_space<vmem>>, vector<16x128xf32>
      tpu.vector_store %arg9[%c0_20, %c0_21], %26 {strides = array<i32>} : memref<16x128xf32, #tpu.memory_space<vmem>>, vector<16x128xf32>,
    } else {
    }
    return
  }
  func.func @transform_0(%arg0: i32, %arg1: i32) -> (i32, i32) {
    %c0_i32 = arith.constant 0 : i32
    %c0_i32_0 = arith.constant 0 : i32
    return %arg0, %c0_i32 : i32, i32
  }
  func.func @transform_1(%arg0: i32, %arg1: i32) -> (i32, i32) {
    %c0_i32 = arith.constant 0 : i32
    %c0_i32_0 = arith.constant 0 : i32
    %c0_i32_1 = arith.constant 0 : i32
    return %c0_i32, %c0_i32_0 : i32, i32
  }
  func.func @transform_2(%arg0: i32, %arg1: i32) -> (i32, i32) {
    %c0_i32 = arith.constant 0 : i32
    %c0_i32_0 = arith.constant 0 : i32
    %c0_i32_1 = arith.constant 0 : i32
    return %c0_i32, %c0_i32_0 : i32, i32
  }
  func.func @transform_3(%arg0: i32, %arg1: i32) -> (i32, i32) {
    %c0_i32 = arith.constant 0 : i32
    %c0_i32_0 = arith.constant 0 : i32
    return %c0_i32, %arg1 : i32, i32
  }
  func.func @transform_4(%arg0: i32, %arg1: i32) -> (i32, i32) {
    %c0_i32 = arith.constant 0 : i32
    %c0_i32_0 = arith.constant 0 : i32
    return %c0_i32, %arg1 : i32, i32
  }
  func.func @transform_5(%arg0: i32, %arg1: i32) -> (i32, i32) {
    %c0_i32 = arith.constant 0 : i32
    %c0_i32_0 = arith.constant 0 : i32
    return %arg1, %c0_i32 : i32, i32
  }
  func.func @transform_6(%arg0: i32, %arg1: i32) -> (i32, i32) {
    %c0_i32 = arith.constant 0 : i32
    %c0_i32_0 = arith.constant 0 : i32
    %c0_i32_1 = arith.constant 0 : i32
    return %c0_i32, %c0_i32_0 : i32, i32
  }
  func.func @transform_7(%arg0: i32, %arg1: i32) -> (i32, i32) {
    %c0_i32 = arith.constant 0 : i32
    %c0_i32_0 = arith.constant 0 : i32
    return %arg0, %c0_i32 : i32, i32
  }
}

</mosaic_0001>

<bundles_post_ra>
// kernel: tpu_custom_call.1
= control target key start
LH: loop header
LB: loop body
LE: loop exit
PB: predicated region body
PF: predicated region fallthrough
CT: control target
= control target key end

     0   :  { %12 = vsyncpa [#allocation5], 0  ;;  %s802_s0 = inlined_call_operand.hbm [shape: f32[16,128], index: 0, kind: input, shape index: {}]   ;;  %s803_s1 = inlined_call_operand.hbm [shape: f32[1,128], index: 1, kind: input, shape index: {}]   ;;  %s804_s2 = inlined_call_operand.vmem [shape: f32[1,128], index: 2, kind: input, shape index: {}]   ;;  %s805_s3 = inlined_call_operand.hbm [shape: bf16[128,128], index: 3, kind: input, shape index: {}]   ;;  %s806_s4 = inlined_call_operand.vmem [shape: f32[1,128], index: 4, kind: input, shape index: {}]   ;;  %s807_s5 = inlined_call_operand.hbm [shape: bf16[128,128], index: 5, kind: input, shape index: {}]   ;;  %s808_s6 = inlined_call_operand.vmem [shape: f32[1,128], index: 6, kind: input, shape index: {}]   ;;  %s809_s7 = inlined_call_operand.hbm [shape: f32[16,128], index: 7, kind: output, shape index: {}]  }
   0x1   :  { %13 = vsyncpa [#allocation8], 0 }
   0x2   :  { %14 = vsyncpa [#allocation11], 0  ;;  %s34_s26 = sshll.u32 %s803_s1, 4  ;;  %s35_s26 = int_to_ptr.hbm [resolvable:$true] %s34_s26 }
   0x3   :  { %15 = vsyncpa [#allocation6], 0  ;;  %s695_s27 = smov [#allocation7]   ;;  %s20_s8 = sshll.u32 %s802_s0, 4  ;;  %s21_s8 = int_to_ptr.hbm [resolvable:$true] %s20_s8 }
   0x4   :  { %s36_s28 = sshll.u32 %s695_s27, 4  ;;  %s696_s9 = smov [#allocation4]   ;;  %s37_s28 = int_to_ptr.vmem [resolvable:$true] %s36_s28 }
   0x5   :  { %39 = dma.hbm_to_vmem [thread:$0]  %s35_s26, 16, %s37_s28, [#allocation8]  }
   0x6   :  { %s22_s10 = sshll.u32 %s696_s9, 4  ;;  %s697_s11 = smov 128   ;;  %s23_s10 = int_to_ptr.vmem [resolvable:$true] %s22_s10 }
   0x7   :  { %s698_s12 = smov 8   ;;  %s46_s14 = sshll.u32 %s805_s3, 4  ;;  %s47_s14 = int_to_ptr.hbm [resolvable:$true] %s46_s14 }
   0x8   :  { %28 = dma.hbm_to_vmem [thread:$0]  %s21_s8, 256, %s23_s10, [#allocation5], %s697_s11, %s697_s11, %s698_s12  }
   0x9   :  { %s699_s15 = smov [#allocation9]   ;;  %s61_s18 = sshll.u32 %s807_s5, 4  ;;  %s62_s18 = int_to_ptr.hbm [resolvable:$true] %s61_s18 }
   0xa   :  { %s48_s16 = sshll.u32 %s699_s15, 4  ;;  %s700_s19 = smov 64   ;;  %s49_s16 = int_to_ptr.vmem [resolvable:$true] %s48_s16 }
   0xb   :  { %s701_s20 = smov 4   ;;  %s702_s21 = smov [#allocation10]  }
   0xc   :  { %54 = dma.hbm_to_vmem [thread:$0]  %s47_s14, 1024, %s49_s16, [#allocation8], %s700_s19, %s700_s19, %s701_s20  }
   0xd   :  { %s63_s22 = sshll.u32 %s702_s21, 4  ;;  %s64_s22 = int_to_ptr.vmem [resolvable:$true] %s63_s22 }
   0xe   :  { %69 = dma.hbm_to_vmem [thread:$0]  %s62_s18, 1024, %s64_s22, [#allocation11], %s700_s19, %s700_s19, %s701_s20  }
   0xf   :  { %687 = dma.done.wait [#allocation5], 256  }
  0x10   :  { %688 = vsyncadd [#allocation5], 4294967040 }
  0x11   :  { %689 = dma.done.wait [#allocation8], 1040  }
  0x12   :  { %690 = vsyncadd [#allocation8], 4294966256 }
  0x13   :  { %691 = dma.done.wait [#allocation11], 1024  }
  0x14   :  { %692 = vsyncadd [#allocation11], 4294966272  ;;  %v759_v0 = vld [vmem:[#allocation4] sm:$0xff]  ;;  %v762_v1 = vld [vmem:[#allocation4 + $0x8] sm:$0xff]  ;;  %v94_v2 = vlaneseq  ;;  %s703_s25 = smov [#allocation12]   ;;  %s439_s29 = sshll.u32 %s809_s7, 4  ;;  %s440_s29 = int_to_ptr.hbm [resolvable:$true] %s439_s29 }
  0x15   :  { %97 = vadd.xlane.f32.xlu0 %v759_v0  ;;  %v532_v14 = vld [vmem:[#allocation9 + $0x38] sm:$0xff]  ;;  %v531_v15 = vld [vmem:[#allocation9 + $0x30] sm:$0xff]  ;;  %v530_v16 = vld [vmem:[#allocation9 + $0x28] sm:$0xff]  ;;  %s437_s26 = sshll.u32 %s703_s25, 4  ;;  %s438_s26 = int_to_ptr.vmem [resolvable:$true] %s437_s26 }
  0x16   :  { %v95_v3 = vand.u32 127, %v94_v2  ;;  %239 = vmatpush.bf16.msra.mxu0 %v532_v14  ;;  %v529_v17 = vld [vmem:[#allocation9 + $0x20] sm:$0xff]  ;;  %v528_v18 = vld [vmem:[#allocation9 + $0x18] sm:$0xff]  ;;  %v527_v22 = vld [vmem:[#allocation9 + $0x10] sm:$0xff] }
  0x17   :  { %v526_v23 = vld [vmem:[#allocation9 + $0x8] sm:$0xff]  ;;  %v525_v26 = vld [vmem:[#allocation9] sm:$0xff]  ;;  %v555_v40 = vld [vmem:[#allocation7] ss:$0 sm:$0xff] }
  0x18   :  { %vm96_vm0 = vcmp.lt.s32.totalorder %v95_v3, 32  ;;  %v556_v44 = vld [vmem:[%s804_s2] ss:$0 sm:$0xff]  ;;  %v540_v53 = vld [vmem:[#allocation10 + $0x38] sm:$0xff]  ;;  %v539_v57 = vld [vmem:[#allocation10 + $0x30] sm:$0xff] }
  0x19   :  { %v557_v52 = vld [vmem:[%s806_s4] ss:$0 sm:$0xff]  ;;  %408 = vmatpush.bf16.msra.mxu1 %v540_v53  ;;  %v538_v59 = vld [vmem:[#allocation10 + $0x28] sm:$0xff]  ;;  %v535_v14 = vld [vmem:[#allocation10 + $0x10] sm:$0xff] }
  0x1a   :  { %240 = vmatpush.bf16.msra.mxu0 %v531_v15  ;;  %v537_v2 = vld [vmem:[#allocation10 + $0x20] sm:$0xff] }
  0x1d   :  { %99 = vadd.xlane.f32.xlu0 %v762_v1  ;;  %409 = vmatpush.bf16.msra.mxu1 %v539_v57 }
  0x1e   :  { %241 = vmatpush.bf16.msra.mxu0 %v530_v16 }
  0x21   :  { %410 = vmatpush.bf16.msra.mxu1 %v538_v59 }
  0x22   :  { %242 = vmatpush.bf16.msra.mxu0 %v529_v17 }
  0x25   :  { %411 = vmatpush.bf16.msra.mxu1 %v537_v2 }
  0x26   :  { %243 = vmatpush.bf16.msra.mxu0 %v528_v18 }
  0x2a   :  { %244 = vmatpush.bf16.msra.mxu0 %v527_v22  ;;  %v534_v22 = vld [vmem:[#allocation10 + $0x8] sm:$0xff] }
  0x2e   :  { %245 = vmatpush.bf16.msra.mxu0 %v526_v23 }
  0x32   :  { %246 = vmatpush.bf16.msra.mxu0 %v525_v26 }
  0x88   :  { %v98_v4 = vpop.xlane.xlu0 %97 }
  0x89   :  { %v101_v5 = vmul.f32 0.03125, %v98_v4 }
  0x8b   :  { %v103_v6 = vsub.f32 %v759_v0, %v101_v5 }
  0x8d   :  { %v105_v7 = vsel %vm96_vm0, %v103_v6, 0.0 }
  0x8e   :  { %v107_v8 = vmul.f32 %v105_v7, %v105_v7 }
  0x90   :  { %109 = vadd.xlane.f32.xlu1 %v107_v8  ;;  %v100_v9 = vpop.xlane.xlu0 %99  ;;  %v536_v8 = vld [vmem:[#allocation10 + $0x18] sm:$0xff] }
  0x91   :  { %v102_v10 = vmul.f32 0.03125, %v100_v9  ;;  %412 = vmatpush.bf16.msra.mxu1 %v536_v8 }
  0x93   :  { %v104_v11 = vsub.f32 %v762_v1, %v102_v10 }
  0x95   :  { %v106_v12 = vsel %vm96_vm0, %v104_v11, 0.0  ;;  %413 = vmatpush.bf16.msra.mxu1 %v535_v14 }
  0x96   :  { %v108_v13 = vmul.f32 %v106_v12, %v106_v12 }
  0x98   :  { %111 = vadd.xlane.f32.xlu1 %v108_v13 }
  0x99   :  { %414 = vmatpush.bf16.msra.mxu1 %v534_v22 }
 0x103   :  { %v110_v19 = vpop.xlane.xlu1 %109 }
 0x104   :  { %v113_v20 = vmul.f32 0.03125, %v110_v19 }
 0x106   :  { %v115_v21 = vadd.f32 1e-05, %v113_v20 }
 0x108   :  { %559 = vrsqrt.f32 %v115_v21  ;;  %vm123_vm2 = vweird.f32 %v115_v21 }
 0x10b   :  { %v112_v24 = vpop.xlane.xlu1 %111 }
 0x10c   :  { %v114_v25 = vmul.f32 0.03125, %v112_v24 }
 0x10e   :  { %v560_v27 = vpop.eup %559  ;;  %v116_v28 = vadd.f32 1e-05, %v114_v25 }
 0x10f   :  { %v118_v29 = vmul.f32 %v560_v27, %v115_v21  ;;  %vm124_vm1 = vweird.f32 %v560_v27 }
 0x110   :  { %561 = vrsqrt.f32 %v116_v28  ;;  %vm125_vm3 = vmor %vm123_vm2, %vm124_vm1  ;;  %vm133_vm5 = vweird.f32 %v116_v28 }
 0x111   :  { %v119_v30 = vmul.f32 %v560_v27, %v118_v29  ;;  %v533_v29 = vld [vmem:[#allocation10] sm:$0xff] }
 0x112   :  { %415 = vmatpush.bf16.msra.mxu1 %v533_v29 }
 0x113   :  { %v120_v31 = vmul.f32 0.5, %v119_v30 }
 0x115   :  { %v121_v32 = vsub.f32 1.5, %v120_v31 }
 0x116   :  { %v562_v33 = vpop.eup %561 }
 0x117   :  { %v122_v34 = vmul.f32 %v560_v27, %v121_v32  ;;  %v128_v35 = vmul.f32 %v562_v33, %v116_v28  ;;  %vm134_vm4 = vweird.f32 %v562_v33 }
 0x118   :  { %vm135_vm6 = vmor %vm133_vm5, %vm134_vm4 }
 0x119   :  { %v129_v36 = vmul.f32 %v562_v33, %v128_v35  ;;  %v126_v37 = vsel %vm125_vm3, %v560_v27, %v122_v34 }
 0x11a   :  { %v137_v41 = vmul.f32 %v126_v37, %v105_v7 }
 0x11b   :  { %v130_v38 = vmul.f32 0.5, %v129_v36 }
 0x11c   :  { %v143_v45 = vmul.f32 %v555_v40, %v137_v41 }
 0x11d   :  { %v131_v39 = vsub.f32 1.5, %v130_v38 }
 0x11e   :  { %v149_v48 = vadd.f32 %v556_v44, %v143_v45 }
 0x11f   :  { %v132_v42 = vmul.f32 %v562_v33, %v131_v39 }
 0x121   :  { %v136_v43 = vsel %vm135_vm6, %v562_v33, %v132_v42 }
 0x122   :  { %v138_v46 = vmul.f32 %v136_v43, %v106_v12 }
 0x124   :  { %v144_v47 = vmul.f32 %v555_v40, %v138_v46 }
 0x126   :  { %v150_v49 = vadd.f32 %v556_v44, %v144_v47 }
 0x128   :  { %v544_v50 = vpack.c.bf16 %v150_v49, %v149_v48 }
 0x12a   :  { %545 = vst [vmem:[#allocation2] sm:$0xff] %v544_v50  }
 0x131   :  { %v524_v51 = vld [vmem:[#allocation2] sm:$0xff] }
 0x132   :  { %247 = vmatmul.bf16.vlgmr.msra.gmra.mxu0 %v524_v51 }
 0x1af   :  { %v248_v54 = vpop.f32.mrf.mxu0 }
 0x1b0   :  { %v773_v55 = vadd.f32 %v557_v52, %v248_v54 }
 0x1b2   :  { %v776_v56 = vmul.f32 0.70710677, %v773_v55 }
 0x1b4   :  { %v257_v58 = vmul.f32 %v776_v56, %v776_v56 }
 0x1b6   :  { %v258_v60 = vmin.f32 %v257_v58, 16.0 }
 0x1b7   :  { %v250_v61 = vpop.f32.mrf.mxu0 }
 0x1b8   :  { %v259_v62 = vmul.f32 2.1237322e-06, %v258_v60  ;;  %v780_v63 = vadd.f32 %v557_v52, %v250_v61  ;;  %v270_v3 = vmul.f32 3.8918573e-05, %v258_v60 }
 0x1ba   :  { %v260_v4 = vadd.f32 0.00028619796, %v259_v62  ;;  %v783_v5 = vmul.f32 0.70710677, %v780_v63  ;;  %v271_v6 = vadd.f32 0.001143296, %v270_v3 }
 0x1bc   :  { %v297_v7 = vmul.f32 %v783_v5, %v783_v5  ;;  %v261_v9 = vmul.f32 %v260_v4, %v258_v60  ;;  %v272_v10 = vmul.f32 %v271_v6, %v258_v60 }
 0x1be   :  { %v298_v11 = vmin.f32 %v297_v7, 16.0  ;;  %v273_v12 = vadd.f32 0.014752088, %v272_v10  ;;  %v262_v16 = vadd.f32 0.0036580483, %v261_v9 }
 0x1c0   :  { %v299_v13 = vmul.f32 2.1237322e-06, %v298_v11  ;;  %v310_v15 = vmul.f32 3.8918573e-05, %v298_v11  ;;  %v274_v17 = vmul.f32 %v273_v12, %v258_v60  ;;  %v263_v24 = vmul.f32 %v262_v16, %v258_v60 }
 0x1c2   :  { %v300_v18 = vadd.f32 0.00028619796, %v299_v13  ;;  %v311_v19 = vadd.f32 0.001143296, %v310_v15  ;;  %v275_v20 = vadd.f32 0.112945676, %v274_v17 }
 0x1c3   :  { %v264_v31 = vadd.f32 0.05243302, %v263_v24  ;;  %v253_v17 = vmul.f32 0.5, %v773_v55 }
 0x1c4   :  { %v301_v21 = vmul.f32 %v300_v18, %v298_v11  ;;  %v312_v23 = vmul.f32 %v311_v19, %v298_v11  ;;  %v276_v25 = vmul.f32 %v275_v20, %v258_v60  ;;  %v254_v18 = vmul.f32 0.5, %v780_v63 }
 0x1c5   :  { %v265_v37 = vmul.f32 %v264_v31, %v258_v60 }
 0x1c6   :  { %v302_v26 = vadd.f32 0.0036580483, %v301_v21  ;;  %v313_v27 = vadd.f32 0.014752088, %v312_v23  ;;  %v277_v28 = vadd.f32 0.4994258, %v276_v25 }
 0x1c7   :  { %v266_v41 = vadd.f32 0.18741608, %v265_v37 }
 0x1c8   :  { %v314_v30 = vmul.f32 %v313_v27, %v298_v11  ;;  %v278_v32 = vmul.f32 %v277_v28, %v258_v60  ;;  %v303_v33 = vmul.f32 %v302_v26, %v298_v11 }
 0x1c9   :  { %v267_v46 = vmul.f32 %v266_v41, %v258_v60 }
 0x1ca   :  { %v315_v34 = vadd.f32 0.112945676, %v314_v30  ;;  %v279_v35 = vadd.f32 1.0, %v278_v32  ;;  %v304_v38 = vadd.f32 0.05243302, %v303_v33 }
 0x1cb   :  { %v268_v52 = vadd.f32 1.1283791, %v267_v46 }
 0x1cc   :  { %v316_v36 = vmul.f32 %v315_v34, %v298_v11  ;;  %563 = vrcp.f32 %v279_v35  ;;  %v305_v42 = vmul.f32 %v304_v38, %v298_v11  ;;  %v291_v49 = vand.u32 2147483648, %v279_v35 }
 0x1cd   :  { %v289_v51 = vand.u32 2147483647, %v279_v35  ;;  %vm285_vm8 = vweird.f32 %v279_v35  ;;  %v269_v62 = vmul.f32 %v268_v52, %v776_v56 }
 0x1ce   :  { %v317_v39 = vadd.f32 0.4994258, %v316_v36  ;;  %v306_v47 = vadd.f32 0.18741608, %v305_v42  ;;  %v292_v58 = vor.u32 1.1754944e-38, %v291_v49 }
 0x1cf   :  { %vm290_vm10 = vcmp.eq.f32.partialorder %v289_v51, 8.507059e+37 }
 0x1d0   :  { %v318_v40 = vmul.f32 %v317_v39, %v298_v11  ;;  %v307_v54 = vmul.f32 %v306_v47, %v298_v11 }
 0x1d2   :  { %v319_v43 = vadd.f32 1.0, %v318_v40  ;;  %v564_v44 = vpop.eup %563  ;;  %v308_v3 = vadd.f32 1.1283791, %v307_v54 }
 0x1d3   :  { %v281_v45 = vmul.f32 %v564_v44, %v279_v35  ;;  %vm286_vm7 = vweird.f32 %v564_v44 }
 0x1d4   :  { %565 = vrcp.f32 %v319_v43  ;;  %vm287_vm9 = vmor %vm285_vm8, %vm286_vm7  ;;  %v331_v4 = vand.u32 2147483648, %v319_v43  ;;  %v329_v8 = vand.u32 2147483647, %v319_v43  ;;  %vm325_vm12 = vweird.f32 %v319_v43 }
 0x1d5   :  { %v282_v48 = vsub.f32 1.0, %v281_v45  ;;  %v309_v11 = vmul.f32 %v308_v3, %v783_v5  ;;  %v558_v5 = vld [vmem:[%s808_s6] ss:$0 sm:$0xff] }
 0x1d6   :  { %v332_v10 = vor.u32 1.1754944e-38, %v331_v4  ;;  %vm330_vm14 = vcmp.eq.f32.partialorder %v329_v8, 8.507059e+37  ;;  %v159_v23 = vadd.f32 %v558_v5, %v759_v0  ;;  %v160_v26 = vadd.f32 %v558_v5, %v762_v1 }
 0x1d7   :  { %v283_v50 = vmul.f32 %v564_v44, %v282_v48 }
 0x1d9   :  { %v284_v57 = vadd.f32 %v564_v44, %v283_v50 }
 0x1da   :  { %v566_v53 = vpop.eup %565 }
 0x1db   :  { %v321_v59 = vmul.f32 %v566_v53, %v319_v43  ;;  %v288_v61 = vsel %vm287_vm9, %v564_v44, %v284_v57  ;;  %vm326_vm11 = vweird.f32 %v566_v53 }
 0x1dc   :  { %v293_v2 = vsel %vm290_vm10, %v292_v58, %v288_v61  ;;  %vm327_vm13 = vmor %vm325_vm12, %vm326_vm11 }
 0x1dd   :  { %v322_v60 = vsub.f32 1.0, %v321_v59  ;;  %v294_v6 = vmul.f32 %v293_v2, %v269_v62 }
 0x1df   :  { %v323_v7 = vmul.f32 %v566_v53, %v322_v60  ;;  %v490_v12 = vclamps-f32 %v294_v6, 1.0 }
 0x1e1   :  { %v324_v9 = vadd.f32 %v566_v53, %v323_v7  ;;  %v337_v16 = vadd.f32 1.0, %v490_v12 }
 0x1e3   :  { %v328_v13 = vsel %vm327_vm13, %v566_v53, %v324_v9  ;;  %v339_v20 = vmul.f32 %v337_v16, %v253_v17 }
 0x1e4   :  { %v333_v14 = vsel %vm330_vm14, %v332_v10, %v328_v13 }
 0x1e5   :  { %v334_v15 = vmul.f32 %v333_v14, %v309_v11 }
 0x1e7   :  { %v491_v56 = vclamps-f32 %v334_v15, 1.0 }
 0x1e9   :  { %v338_v19 = vadd.f32 1.0, %v491_v56 }
 0x1eb   :  { %v340_v21 = vmul.f32 %v338_v19, %v254_v18 }
 0x1ed   :  { %v343_v22 = vpack.c.bf16 %v340_v21, %v339_v20 }
 0x1ef   :  { %416 = vmatmul.bf16.vlgmr.msra.gmra.mxu1 %v343_v22 }
 0x26c   :  { %v417_v24 = vpop.f32.mrf.mxu1 }
 0x26d   :  { %v422_v25 = vadd.f32 %v417_v24, %v159_v23 }
 0x26f   :  { %431 = vst [vmem:[#allocation12] sm:$0xff] %v422_v25 }
 0x274   :  { %v419_v55 = vpop.f32.mrf.mxu1 }
 0x275   :  { %v423_v63 = vadd.f32 %v419_v55, %v160_v26 }
 0x277   :  { %432 = vst [vmem:[#allocation12 + $0x8] sm:$0xff] %v423_v63 }
 0x278   :  { %445 = dma.vmem_to_hbm [thread:$0]  %s438_s26, 256, %s440_s29, [#allocation6], %s697_s11, %s697_s11, %s698_s12  }
 0x279   :  { %693 = dma.done.wait [#allocation6], 256  }
 0x27a   :  { %694 = vsyncadd [#allocation6], 4294967040 }
 0x27b   :  { %450 = vsyncpa [#allocation5], 1 }
 0x27c   :  { %451 = vsyncpa [#allocation8], 1 }
 0x27d   :  { %452 = vsyncpa [#allocation11], 1 }
 0x27e   :  { %453 = vsyncpa [#allocation6], 1 }

</bundles_post_ra>
